<compile_context>
chip_gen: v7x
topology: tpu7x:2x2x1
jax: 0.10.0
libtpu: 0.0.40
codegen_flags: <defaults>
</compile_context>

<pallas_src>
import jax
import jax.numpy as jnp
from jax.experimental import pallas as pl
from jax.experimental.pallas import tpu as pltpu

D_IN = 32 * 32          # 1024, from Discriminator(D=32*32)
H_REAL = 300            # nn.Linear(1024, 300)
H_PAD = 384             # padded hidden (multiple of 128)
OUT = 1                 # nn.Linear(300, 1)
TB_MAX = 1024           # max batch-tile rows (fits v5e 16 MiB scoped VMEM with f32 x blocks)


def _round_up(n, m):
    return ((n + m - 1) // m) * m


def _cdiv(a, b):
    return (a + b - 1) // b


def _disc_kernel(x_ref, w1_ref, b1_ref, w2_ref, b2_ref, o_ref):
    # x: (TB, D) f32 (or bf16), w1: (D, H_PAD) bf16, b1: (1, H_PAD) f32,
    # w2: (1, H_PAD) f32 row, b2: (1, 1) f32 in SMEM, o: (TB, 1) f32.
    # In-kernel bf16 cast (no-op if x is already bf16); hidden under DMA/MXU.
    x_bf = x_ref[...].astype(jnp.bfloat16)
    # Layer 1: bf16 MXU matmul with f32 accumulation, then f32 bias + ReLU (VPU).
    h = jnp.dot(x_bf, w1_ref[...], preferred_element_type=jnp.float32)
    h = jnp.maximum(h + b1_ref[...], 0.0)
    # Layer 2 (N=1): VPU multiply + XLU lane reduction instead of a skinny MXU matmul.
    logit = jnp.sum(h * w2_ref[...], axis=-1, keepdims=True) + b2_ref[0, 0]
    # Sigmoid (EUP).
    o_ref[...] = jax.nn.sigmoid(logit)


def discriminator_forward(x, w1, b1, w2_row, b2, *, tb_max=TB_MAX):
    """x: (B, D) f32 (or bf16). w1: (D, H_PAD) f32/bf16, b1: (1, H_PAD) f32,
    w2_row: (1, H_PAD) f32, b2: (1, 1) f32. Returns (B, 1) f32 probabilities."""
    B = x.shape[0]
    B8 = _round_up(B, 8)
    # At least 2 grid steps (v7x megacore: both TCs get work), even count so the split is balanced.
    num_tiles = _round_up(max(2, _cdiv(B8, tb_max)), 2)
    TB = _round_up(_cdiv(B8, num_tiles), 8)           # batch-tile rows (multiple of 8 sublanes)
    B_pad = num_tiles * TB                            # pads at most a few sublane rows per tile

    # x is streamed in its given dtype (f32 by default; cast to bf16 happens inside the kernel).
    if B_pad != B:
        x = jnp.pad(x, ((0, B_pad - B), (0, 0)))
    # Weights are tiny and VMEM-resident: keep/convert w1 to bf16 for the MXU.
    w1_bf = w1 if w1.dtype == jnp.bfloat16 else w1.astype(jnp.bfloat16)

    x_bytes = jnp.dtype(x.dtype).itemsize
    vmem_budget = (2 * TB * D_IN * x_bytes            # double-buffered x blocks
                   + 2 * D_IN * H_PAD * 2             # w1 (bf16), conservatively double-buffered
                   + 4 * TB * H_PAD * 4               # f32 hidden intermediates
                   + (2 << 20))                       # slack: b1/w2/out buffers, misc scratch

    grid = (num_tiles,)
    out = pl.pallas_call(
        _disc_kernel,
        out_shape=jax.ShapeDtypeStruct((B_pad, OUT), jnp.float32),
        grid=grid,
        in_specs=[
            pl.BlockSpec((TB, D_IN), lambda i: (i, 0)),         # x: pipelined over batch tiles
            pl.BlockSpec((D_IN, H_PAD), lambda i: (0, 0)),      # w1: VMEM-resident
            pl.BlockSpec((1, H_PAD), lambda i: (0, 0)),         # b1: VMEM-resident
            pl.BlockSpec((1, H_PAD), lambda i: (0, 0)),         # w2 row: VMEM-resident
            pl.BlockSpec(memory_space=pltpu.MemorySpace.SMEM),  # b2: SMEM scalar
        ],
        out_specs=pl.BlockSpec((TB, OUT), lambda i: (i, 0)),
        compiler_params=pltpu.CompilerParams(
            dimension_semantics=("parallel",),
            vmem_limit_bytes=int(vmem_budget)),
    )(x, w1_bf, b1, w2_row, b2)
    return out[:B]


def init_params(key):
    """Deterministic init mimicking PyTorch nn.Linear default (U(-1/sqrt(fan_in), +1/sqrt(fan_in)))."""
    k1, k2, k3, k4 = jax.random.split(key, 4)
    bound1 = 1.0 / jnp.sqrt(jnp.float32(D_IN))
    bound2 = 1.0 / jnp.sqrt(jnp.float32(H_REAL))
    # dis1: weight (300, 1024), bias (300,) — stored transposed & zero-padded to H_PAD.
    w1_t = jax.random.uniform(k1, (D_IN, H_REAL), jnp.float32, -bound1, bound1)
    b1 = jax.random.uniform(k2, (H_REAL,), jnp.float32, -bound1, bound1)
    w1_pad = jnp.zeros((D_IN, H_PAD), jnp.float32).at[:, :H_REAL].set(w1_t)
    b1_pad = jnp.zeros((1, H_PAD), jnp.float32).at[0, :H_REAL].set(b1)
    # dis2: weight (1, 300), bias (1,) — stored as a zero-padded (1, H_PAD) row.
    w2 = jax.random.uniform(k3, (1, H_REAL), jnp.float32, -bound2, bound2)
    b2 = jax.random.uniform(k4, (OUT,), jnp.float32, -bound2, bound2)
    w2_row = jnp.zeros((1, H_PAD), jnp.float32).at[:, :H_REAL].set(w2)
    b2_pad = b2.reshape(1, OUT)
    return w1_pad, b1_pad, w2_row, b2_pad


def reference_forward(x, w1, b1, w2_row, b2):
    h = jnp.maximum(x @ w1 + b1, 0.0)
    return jax.nn.sigmoid(jnp.sum(h * w2_row, axis=-1, keepdims=True) + b2[0, 0])


if __name__ == "__main__":
    key = jax.random.PRNGKey(0)
    kx, kp = jax.random.split(key)
    B = 8
    x = jax.random.normal(kx, (B, D_IN), jnp.float32)
    w1, b1, w2_row, b2 = init_params(kp)

    out = discriminator_forward(x, w1, b1, w2_row, b2)
    out = jax.block_until_ready(out)
    assert out.shape == (B, OUT)

    # Reference with the same bf16 rounding the kernel applies (f32 accumulation on the MXU).
    ref_bf = reference_forward(x.astype(jnp.bfloat16).astype(jnp.float32),
                               w1.astype(jnp.bfloat16).astype(jnp.float32),
                               b1, w2_row, b2)
    assert jnp.allclose(out, ref_bf, atol=1e-3, rtol=1e-3)

    # Full-f32 reference (original module semantics); looser tolerance for the bf16 matmul inputs.
    ref_f32 = reference_forward(x, w1, b1, w2_row, b2)
    assert jnp.allclose(out, ref_f32, atol=3e-2, rtol=3e-2)

    print("KERNEL_OK")
</pallas_src>

<mosaic_0001>
module attributes {stable_mosaic.version = 11 : i64} {
  func.func @_disc_kernel(%arg0: i32, %arg1: memref<8x1024xf32, #tpu.memory_space<vmem>>, %arg2: memref<1024x384xbf16, #tpu.memory_space<vmem>>, %arg3: memref<1x384xf32, #tpu.memory_space<vmem>>, %arg4: memref<1x384xf32, #tpu.memory_space<vmem>>, %arg5: memref<1x1xf32, #tpu.memory_space<smem>>, %arg6: memref<8x1xf32, #tpu.memory_space<vmem>>) attributes {dimension_semantics = [#tpu.dimension_semantics<parallel>], iteration_bounds = array<i64: 2>, scalar_prefetch = 0 : i64, scratch_operands = 0 : i64, tpu.core_type = #tpu.core_type<tc>, window_params = [{transform_indices = @transform_0, window_bounds = array<i64: 8, 1024>}, {pipeline_mode = #tpu.pipeline_mode<synchronous>, transform_indices = @transform_1, window_bounds = array<i64: 1024, 384>}, {pipeline_mode = #tpu.pipeline_mode<synchronous>, transform_indices = @transform_2, window_bounds = array<i64: 1, 384>}, {pipeline_mode = #tpu.pipeline_mode<synchronous>, transform_indices = @transform_3, window_bounds = array<i64: 1, 384>}, {transform_indices = @transform_4, window_bounds = array<i64: 1, 1>}, {transform_indices = @transform_5, window_bounds = array<i64: 8, 1>}]} {
    %c0 = arith.constant 0 : index
    %c0_0 = arith.constant 0 : index
    %0 = vector.load %arg1[%c0, %c0_0] : memref<8x1024xf32, #tpu.memory_space<vmem>>, vector<8x1024xf32>
    %1 = arith.truncf %0 : vector<8x1024xf32> to vector<8x1024xbf16>
    %c0_1 = arith.constant 0 : index
    %c0_2 = arith.constant 0 : index
    %2 = vector.load %arg2[%c0_1, %c0_2] : memref<1024x384xbf16, #tpu.memory_space<vmem>>, vector<1024x384xbf16>
    %cst = arith.constant dense<0.000000e+00> : vector<8x384xf32>
    %3 = tpu.matmul %1, %2, %cst {dimension_numbers = #tpu.dot_dimension_numbers<[1], [0], [0], [1], [0, 0, 1, 1], [], []>} : vector<8x1024xbf16>, vector<1024x384xbf16>, vector<8x384xf32> -> vector<8x384xf32>
    %c0_3 = arith.constant 0 : index
    %c0_4 = arith.constant 0 : index
    %4 = vector.load %arg3[%c0_3, %c0_4] : memref<1x384xf32, #tpu.memory_space<vmem>>, vector<1x384xf32>
    %5 = vector.broadcast %4 : vector<1x384xf32> to vector<8x384xf32>
    %6 = arith.addf %3, %5 : vector<8x384xf32>
    %cst_5 = arith.constant 0.000000e+00 : f32
    %7 = vector.broadcast %cst_5 : f32 to vector<8x384xf32>
    %8 = arith.maximumf %6, %7 : vector<8x384xf32>
    %c0_6 = arith.constant 0 : index
    %c0_7 = arith.constant 0 : index
    %9 = vector.load %arg4[%c0_6, %c0_7] : memref<1x384xf32, #tpu.memory_space<vmem>>, vector<1x384xf32>
    %10 = vector.broadcast %9 : vector<1x384xf32> to vector<8x384xf32>
    %11 = arith.mulf %8, %10 : vector<8x384xf32>
    %cst_8 = arith.constant dense<0.000000e+00> : vector<8xf32>
    %12 = vector.multi_reduction <add>, %11, %cst_8 [1] : vector<8x384xf32> to vector<8xf32>
    %13 = vector.shape_cast %12 : vector<8xf32> to vector<8x1xf32>
    %c0_9 = arith.constant 0 : index
    %c0_10 = arith.constant 0 : index
    %14 = memref.load %arg5[%c0_9, %c0_10] : memref<1x1xf32, #tpu.memory_space<smem>>
    %15 = vector.broadcast %14 : f32 to vector<8x1xf32>
    %16 = arith.addf %13, %15 : vector<8x1xf32>
    %17 = arith.negf %16 : vector<8x1xf32>
    %18 = math.exp %17 : vector<8x1xf32>
    %cst_11 = arith.constant 1.000000e+00 : f32
    %19 = vector.broadcast %cst_11 : f32 to vector<8x1xf32>
    %20 = arith.addf %19, %18 : vector<8x1xf32>
    %21 = arith.divf %19, %20 : vector<8x1xf32>
    %c0_12 = arith.constant 0 : index
    %c0_13 = arith.constant 0 : index
    %22 = vector.load %arg6[%c0_12, %c0_13] : memref<8x1xf32, #tpu.memory_space<vmem>>, vector<8x1xf32>
    tpu.vector_store %arg6[%c0_12, %c0_13], %21 {strides = array<i32>} : memref<8x1xf32, #tpu.memory_space<vmem>>, vector<8x1xf32>,
    return
  }
  func.func @transform_0(%arg0: i32) -> (i32, i32) {
    %c0_i32 = arith.constant 0 : i32
    %c0_i32_0 = arith.constant 0 : i32
    return %arg0, %c0_i32 : i32, i32
  }
  func.func @transform_1(%arg0: i32) -> (i32, i32) {
    %c0_i32 = arith.constant 0 : i32
    %c0_i32_0 = arith.constant 0 : i32
    %c0_i32_1 = arith.constant 0 : i32
    return %c0_i32, %c0_i32_0 : i32, i32
  }
  func.func @transform_2(%arg0: i32) -> (i32, i32) {
    %c0_i32 = arith.constant 0 : i32
    %c0_i32_0 = arith.constant 0 : i32
    %c0_i32_1 = arith.constant 0 : i32
    return %c0_i32, %c0_i32_0 : i32, i32
  }
  func.func @transform_3(%arg0: i32) -> (i32, i32) {
    %c0_i32 = arith.constant 0 : i32
    %c0_i32_0 = arith.constant 0 : i32
    %c0_i32_1 = arith.constant 0 : i32
    return %c0_i32, %c0_i32_0 : i32, i32
  }
  func.func @transform_4(%arg0: i32) -> (i32, i32) {
    %c0_i32 = arith.constant 0 : i32
    %c0_i32_0 = arith.constant 0 : i32
    %c0_i32_1 = arith.constant 0 : i32
    return %c0_i32, %c0_i32_0 : i32, i32
  }
  func.func @transform_5(%arg0: i32) -> (i32, i32) {
    %c0_i32 = arith.constant 0 : i32
    %c0_i32_0 = arith.constant 0 : i32
    return %arg0, %c0_i32 : i32, i32
  }
}

</mosaic_0001>

<bundles_post_ra>
// kernel: tpu_custom_call.1
= control target key start
LH: loop header
LB: loop body
LE: loop exit
PB: predicated region body
PF: predicated region fallthrough
CT: control target
= control target key end

     0   :  { %s2941_s0 = inlined_call_operand.hbm [shape: f32[16,1024], index: 0, kind: input, shape index: {}]   ;;  %s2942_s1 = inlined_call_operand.hbm [shape: bf16[1024,384], index: 1, kind: input, shape index: {}]   ;;  %s2943_s2 = inlined_call_operand.vmem [shape: f32[1,384], index: 2, kind: input, shape index: {}]   ;;  %s2944_s3 = inlined_call_operand.vmem [shape: f32[1,384], index: 3, kind: input, shape index: {}]   ;;  %s2945_s4 = inlined_call_operand.<no memory space> [shape: f32[1,1], index: 4, kind: input, shape index: {}]   ;;  %s2946_s5 = inlined_call_operand.vmem [shape: f32[16,1], index: 5, kind: output, shape index: {}]  }
   0x1   :  { %10 = sst [smem:[#allocation2]] %s2945_s4 }
   0x2   :  { %11 = vsyncpa [#allocation4], 0 }
   0x3   :  { %13 = vsyncpa [#allocation4 + $0x1], 0 }
   0x4   :  { %14 = vsyncpa [#allocation6], 0  ;;  %s2762_s20 = smov 0   ;;  %s2764_s21 = smov 0  }
   0x5   :  { %s2766_s22 = smov 0   ;;  %s2768_s23 = smov 0  }
   0x6 LB: > { %s2781_s4 = sadd.s32 4294967295, %s2723_s23   ;;  %p40_p0 = scmp.ne.s32.totalorder %s2715_s21, %s2711_s20  ;;  %s2723_s23 = sphi %s2768_s23, %s2961_s23   ;;  %s2719_s22 = sphi %s2766_s22, %s2960_s22   ;;  %s2715_s21 = sphi %s2764_s21, %s2959_s21   ;;  %s2711_s20 = sphi %s2762_s20, %s2958_s20  }
   0x7   : > { %p2947_p1 = scmp.eq.s32.totalorder %s2781_s4, 0  ;;  %p2009_p2 = scmp.ge.s32.totalorder %s2723_s23, 1 }
   0x8   : > { %p161_p3 = scmp.lt.s32.totalorder %s2723_s23, 3  ;;  %s2725_s26 = smov [#allocation5]  }
   0x9   : > { %p2789_p4 = por %p2947_p1, %p40_p0  ;;  %s173_s27 = sshll.u32 %s2725_s26, 4  ;;  %s174_s27 = int_to_ptr.vmem [resolvable:$true] %s173_s27 }
   0xa   : > { %p2793_p5 = pnand %p2009_p2, %p161_p3  ;;  %s2806_s29 = sadd.s32 1, %s2723_s23  }
   0xb   : > { %s2950_s24 = scalar_select %p2789_p4, 1, 0 }
   0xc   : > { %s2951_s25 = scalar_select %p2793_p5, 1, 0 }
   0xd   : > { %p2321_p6 = pneg %p2793_p5  ;;  %s27_s30 = sadd.s32 1, %s2719_s22 }
   0xe   : > { %s24_s6 = ssub.s32 %s2723_s23, %s2806_s29  ;;  %s2627_s9 = scalar_lea.hbm %s2942_s1, 24576 }
   0xf   : > { %p2801_p7 = pnand %p2321_p6, %p2947_p1  ;;  %p2628_p8 = scmp.ne.s32.totalorder %s2942_s1, %s2627_s9 }
  0x10   : > { %p2634_p12 = scmp.lt.u32.totalorder %s2627_s9, %s2942_s1 }
  0x11   : > { %p2629_p9 = pneg %p2801_p7 }
  0x13   : > { %p2630_p10 = pnand %p2629_p9, %p2628_p8 }
  0x15   : > { %p2631_p11 = pneg %p2630_p10 }
  0x17   : > { %p2636_p13 = pnand %p2634_p12, %p2631_p11 }
  0x19   : > { %2639 = shalt.err (!%p2636_p13)
}
  0x1a   : > { %s2640_s14 = scalar_lea.vmem %s174_s27, 24576  ;;  %p2648_p6 = scmp.lt.s32.totalorder %s174_s27, %s174_s27 }
  0x1b   : > { %p2641_p0 = scmp.ne.s32.totalorder %s174_s27, %s2640_s14  ;;  %p2649_p1 = scmp.lt.s32.totalorder %s2640_s14, %s2640_s14 }
  0x1d   : > { %p2643_p2 = pnand %p2641_p0, %p2629_p9  ;;  %p2650_p4 = por %p2649_p1, %p2648_p6 }
  0x1f   : > { %p2644_p3 = pneg %p2643_p2 }
  0x21   : > { %p2651_p5 = pnand %p2650_p4, %p2644_p3 }
  0x23   : > { %2654 = shalt.err (!%p2651_p5)
}
  0x24   : > { %s2726_s15 = smov 192   ;;  %s2727_s16 = smov 12  }
  0x25   : > { %2324 = dma.hbm_to_vmem [thread:$0]  (!%p2801_p7), %s2942_s1, 24576, %s174_s27, [#allocation6], %s2726_s15, %s2726_s15, %s2727_s16  }
  0x26   : > { %p25_p8 = scmp.eq.s32.totalorder %s24_s6, 0  ;;  %p34_p9 = scmp.ne.s32.totalorder %s2719_s22, %s2715_s21 }
  0x27   : > { %p35_p1 = scmp.eq.s32.totalorder %s2723_s23, 0  ;;  %p2330_p4 = scmp.lt.s32.totalorder %s2723_s23, 2 }
  0x28   : > { %s2832_s19 = scalar_select %p25_p8, %s2719_s22, %s27_s30  }
  0x29   : > { %p36_p5 = por %p35_p1, %p34_p9  ;;  %s196_s20 = sand.u32 1, %s2719_s22  }
  0x2a   : > { %s2012_s26 = sshll.u32 %s196_s20, 6  ;;  %s2214_s7 = sshll.u32 %s2723_s23, 10 }
  0x2b   : > { %s2839_s10 = scalar_lea.hbm %s2941_s0, %s2214_s7  ;;  %s200_s27 = scalar_lea.vmem [#allocation3], %s2012_s26 }
  0x2c   : > { %s208_s28 = sshll.u32 %s200_s27, 4  ;;  %p2843_p7 = pnand %p2330_p4, %p36_p5  ;;  %s2841_s28 = int_to_ptr.vmem [resolvable:$true] %s208_s28 }
  0x2d   : > { %s197_s23 = scalar_lea.sflag [#allocation4], %s196_s20  ;;  %s2655_s6 = scalar_lea.hbm %s2839_s10, 1024 }
  0x2e   : > { %p2656_p10 = scmp.ne.s32.totalorder %s2839_s10, %s2655_s6  ;;  %p2657_p11 = pneg %p2843_p7 }
  0x2f   : > { %s2660_s13 = scalar_lea.hbm %s2941_s0, 2048  ;;  %p2661_p0 = scmp.lt.u32.totalorder %s2839_s10, %s2941_s0 }
  0x30   : > { %p2658_p12 = pnand %p2657_p11, %p2656_p10  ;;  %p2662_p2 = scmp.lt.u32.totalorder %s2660_s13, %s2655_s6 }
  0x31   : > { %p2664_p6 = scmp.lt.u32.totalorder %s2655_s6, %s2839_s10 }
  0x32   : > { %p2659_p13 = pneg %p2658_p12  ;;  %p2663_p3 = por %p2662_p2, %p2661_p0 }
  0x34   : > { %p2665_p8 = por %p2664_p6, %p2663_p3 }
  0x36   : > { %p2666_p9 = pnand %p2665_p8, %p2659_p13 }
  0x38   : > { %2669 = shalt.err (!%p2666_p9)
}
  0x39   : > { %s2670_s16 = scalar_lea.vmem %s2841_s28, 1024  ;;  %s2728_s17 = smov [#allocation3]  }
  0x3a   : > { %p2671_p1 = scmp.ne.s32.totalorder %s2841_s28, %s2670_s16  ;;  %s2675_s18 = sshll.u32 %s2728_s17, 4  ;;  %s2676_s18 = int_to_ptr.vmem [resolvable:$false] %s2675_s18 }
  0x3b   : > { %s2677_s20 = scalar_lea.vmem %s2676_s18, 2048  ;;  %p2678_p10 = scmp.lt.s32.totalorder %s2841_s28, %s2676_s18 }
  0x3c   : > { %p2673_p4 = pnand %p2671_p1, %p2657_p11  ;;  %p2679_p12 = scmp.lt.s32.totalorder %s2677_s20, %s2670_s16 }
  0x3e   : > { %p2674_p5 = pneg %p2673_p4  ;;  %p2680_p0 = por %p2679_p12, %p2678_p10 }
  0x40   : > { %p2681_p2 = pnand %p2680_p0, %p2674_p5 }
  0x42   : > { %2684 = shalt.err (!%p2681_p2)
}
  0x43   : > { %2328 = dma.hbm_to_vmem [thread:$0]  (!%p2843_p7), %s2839_s10, 1024, %s2841_s28, %s197_s23  }
  0x44   : > { %p2954_p13 = scmp.ne.s32.totalorder %s2951_s25, 0 }
  0x45   : > { %s219_s26 = sand.u32 (!%p2954_p13), 1, %s2715_s21   ;;  %p2955_p11 = scmp.ne.s32.totalorder (!%p2954_p13), %s2950_s24, 0 }
  0x46   : > { %217 = sbr.rel (%p2954_p13) target bundleno = 669 (0x29d), region = 40  ;;  %s2016_s7 = sshll.u32 (!%p2954_p13), %s219_s26, 6 }
  0x47   : > { %s220_s8 = scalar_lea.sflag (!%p2954_p13), [#allocation4], %s219_s26  ;;  %s2875_s9 = scalar_lea.vmem (!%p2954_p13), [#allocation3], %s2016_s7 }
  0x4d   : > { %2702 = dma.done.wait (%p2955_p11), %s220_s8, 1024  }
  0x4e   : > { %2704 = vsyncadd (%p2955_p11), %s220_s8, 4294966272  ;;  %p2956_p3 = scmp.eq.s32.totalorder %s2781_s4, 0 }
  0x50   : > { %2706 = dma.done.wait (%p2956_p3), [#allocation6], 24576   ;;  %p2957_p7 = pmov %p2956_p3 }
  0x51   : > { %v2367_v0 = vld [vmem:[#allocation5 + $0x4] ss:$12 sps:$4 sm:$0xff]   ;;  %v2371_v2 = vld [vmem:[#allocation5] ss:$12 sps:$4 sm:$0xff]   ;;  %v2373_v4 = vld [vmem:[#allocation5 + $0x1c] ss:$12 sps:$4 sm:$0xff]  }
  0x52   : > { %2708 = vsyncadd (%p2957_p7), [#allocation6], 4294942720  ;;  %v2369_v1 = vld [vmem:[#allocation5 + $0x184] ss:$12 sps:$4 sm:$0xff]   ;;  %1571 = vmatprep.subr.bf16.mxu1 %v2367_v0  ;;  %v2372_v3 = vld [vmem:[#allocation5 + $0x180] ss:$12 sps:$4 sm:$0xff]  }
  0x53   : > { %1612 = vmatprep.subr.bf16.mxu0 %v2369_v1  ;;  %1572 = vmatpush1.bf16.msra.mxu1 %v2371_v2  ;;  %v2375_v5 = vld [vmem:[#allocation5 + $0x19c] ss:$12 sps:$4 sm:$0xff]   ;;  %v2377_v6 = vld [vmem:[#allocation5 + $0x18] ss:$12 sps:$4 sm:$0xff]   ;;  %v2379_v8 = vld [vmem:[#allocation5 + $0x34] ss:$12 sps:$4 sm:$0xff]  }
  0x54   : > { %1613 = vmatpush1.bf16.msra.mxu0 %v2372_v3  ;;  %1573 = vmatprep.subr.bf16.mxu1 %v2373_v4  ;;  %v2378_v7 = vld [vmem:[#allocation5 + $0x198] ss:$12 sps:$4 sm:$0xff]   ;;  %v2381_v9 = vld [vmem:[#allocation5 + $0x1b4] ss:$12 sps:$4 sm:$0xff]   ;;  %v2383_v10 = vld [vmem:[#allocation5 + $0x30] ss:$12 sps:$4 sm:$0xff]  }
  0x55   : > { %1614 = vmatprep.subr.bf16.mxu0 %v2375_v5  ;;  %v2384_v11 = vld [vmem:[#allocation5 + $0x1b0] ss:$12 sps:$4 sm:$0xff]   ;;  %v2385_v12 = vld [vmem:[#allocation5 + $0x4c] ss:$12 sps:$4 sm:$0xff]   ;;  %v2389_v14 = vld [vmem:[#allocation5 + $0x48] ss:$12 sps:$4 sm:$0xff]  }
  0x56   : > { %v2387_v13 = vld [vmem:[#allocation5 + $0x1cc] ss:$12 sps:$4 sm:$0xff]   ;;  %v2390_v15 = vld [vmem:[#allocation5 + $0x1c8] ss:$12 sps:$4 sm:$0xff]   ;;  %v2391_v16 = vld [vmem:[#allocation5 + $0x64] ss:$12 sps:$4 sm:$0xff]  }
  0x57   : > { %1574 = vmatpush1.bf16.msra.mxu1 %v2377_v6  ;;  %v2393_v17 = vld [vmem:[#allocation5 + $0x1e4] ss:$12 sps:$4 sm:$0xff]   ;;  %v2395_v18 = vld [vmem:[#allocation5 + $0x60] ss:$12 sps:$4 sm:$0xff]   ;;  %v2397_v20 = vld [vmem:[#allocation5 + $0x7c] ss:$12 sps:$4 sm:$0xff]  }
  0x58   : > { %1615 = vmatpush1.bf16.msra.mxu0 %v2378_v7  ;;  %1575 = vmatprep.subr.bf16.mxu1 %v2379_v8  ;;  %v2396_v19 = vld [vmem:[#allocation5 + $0x1e0] ss:$12 sps:$4 sm:$0xff]   ;;  %v2399_v21 = vld [vmem:[#allocation5 + $0x1fc] ss:$12 sps:$4 sm:$0xff]   ;;  %v2401_v22 = vld [vmem:[#allocation5 + $0x78] ss:$12 sps:$4 sm:$0xff]  }
  0x59   : > { %1616 = vmatprep.subr.bf16.mxu0 %v2381_v9  ;;  %v2402_v23 = vld [vmem:[#allocation5 + $0x1f8] ss:$12 sps:$4 sm:$0xff]   ;;  %v2403_v24 = vld [vmem:[#allocation5 + $0x94] ss:$12 sps:$4 sm:$0xff]   ;;  %v2407_v26 = vld [vmem:[#allocation5 + $0x90] ss:$12 sps:$4 sm:$0xff]  }
  0x5a   : > { %v2405_v25 = vld [vmem:[#allocation5 + $0x214] ss:$12 sps:$4 sm:$0xff]   ;;  %v2408_v27 = vld [vmem:[#allocation5 + $0x210] ss:$12 sps:$4 sm:$0xff]   ;;  %v2409_v28 = vld [vmem:[#allocation5 + $0xac] ss:$12 sps:$4 sm:$0xff]  }
  0x5b   : > { %1576 = vmatpush1.bf16.msra.mxu1 %v2383_v10  ;;  %v2411_v29 = vld [vmem:[#allocation5 + $0x22c] ss:$12 sps:$4 sm:$0xff]   ;;  %v2413_v30 = vld [vmem:[#allocation5 + $0xa8] ss:$12 sps:$4 sm:$0xff]   ;;  %v2415_v32 = vld [vmem:[#allocation5 + $0xc4] ss:$12 sps:$4 sm:$0xff]  }
  0x5c   : > { %1617 = vmatpush1.bf16.msra.mxu0 %v2384_v11  ;;  %1577 = vmatprep.subr.bf16.mxu1 %v2385_v12  ;;  %v2414_v31 = vld [vmem:[#allocation5 + $0x228] ss:$12 sps:$4 sm:$0xff]   ;;  %v2417_v33 = vld [vmem:[#allocation5 + $0x244] ss:$12 sps:$4 sm:$0xff]   ;;  %v2419_v34 = vld [vmem:[#allocation5 + $0xc0] ss:$12 sps:$4 sm:$0xff]  }
  0x5d   : > { %1618 = vmatprep.subr.bf16.mxu0 %v2387_v13  ;;  %v2420_v35 = vld [vmem:[#allocation5 + $0x240] ss:$12 sps:$4 sm:$0xff]   ;;  %v2421_v36 = vld [vmem:[#allocation5 + $0xdc] ss:$12 sps:$4 sm:$0xff]   ;;  %v2425_v38 = vld [vmem:[#allocation5 + $0xd8] ss:$12 sps:$4 sm:$0xff]  }
  0x5e   : > { %v2423_v37 = vld [vmem:[#allocation5 + $0x25c] ss:$12 sps:$4 sm:$0xff]   ;;  %v2426_v39 = vld [vmem:[#allocation5 + $0x258] ss:$12 sps:$4 sm:$0xff]   ;;  %v2427_v40 = vld [vmem:[#allocation5 + $0xf4] ss:$12 sps:$4 sm:$0xff]  }
  0x5f   : > { %1578 = vmatpush1.bf16.msra.mxu1 %v2389_v14  ;;  %v2429_v41 = vld [vmem:[#allocation5 + $0x274] ss:$12 sps:$4 sm:$0xff]   ;;  %v2431_v42 = vld [vmem:[#allocation5 + $0xf0] ss:$12 sps:$4 sm:$0xff]   ;;  %v2433_v44 = vld [vmem:[#allocation5 + $0x10c] ss:$12 sps:$4 sm:$0xff]  }
  0x60   : > { %1619 = vmatpush1.bf16.msra.mxu0 %v2390_v15  ;;  %1579 = vmatprep.subr.bf16.mxu1 %v2391_v16  ;;  %v2432_v43 = vld [vmem:[#allocation5 + $0x270] ss:$12 sps:$4 sm:$0xff]   ;;  %v2435_v45 = vld [vmem:[#allocation5 + $0x28c] ss:$12 sps:$4 sm:$0xff]   ;;  %v2437_v47 = vld [vmem:[#allocation5 + $0x108] ss:$12 sps:$4 sm:$0xff]  }
  0x61   : > { %1620 = vmatprep.subr.bf16.mxu0 %v2393_v17  ;;  %v259_v46 = vld [vmem:[%s2875_s9 + $0x8] sm:$0xff]  ;;  %v261_v49 = vld [vmem:[%s2875_s9 + $0x18] sm:$0xff]  ;;  %v2439_v51 = vld [vmem:[#allocation5 + $0x124] ss:$12 sps:$4 sm:$0xff]   ;;  %s1922_s28 = sld [smem:[#allocation2]]  ;;  %p253_p6 = scmp.lt.s32.totalorder %s2781_s4, 1 }
  0x62   : > { %v2886_v48 = vpack.c.bf16 %v259_v46, %v259_v46  ;;  %v2438_v50 = vld [vmem:[#allocation5 + $0x288] ss:$12 sps:$4 sm:$0xff]   ;;  %v2889_v52 = vpack.c.bf16 %v261_v49, %v261_v49  ;;  %v2441_v53 = vld [vmem:[#allocation5 + $0x2a4] ss:$12 sps:$4 sm:$0xff]   ;;  %v2443_v54 = vld [vmem:[#allocation5 + $0x120] ss:$12 sps:$4 sm:$0xff]  }
  0x63   : > { %1580 = vmatpush1.bf16.msra.mxu1 %v2395_v18  ;;  %v2444_v55 = vld [vmem:[#allocation5 + $0x2a0] ss:$12 sps:$4 sm:$0xff]   ;;  %v2445_v56 = vld [vmem:[#allocation5 + $0x13c] ss:$12 sps:$4 sm:$0xff]   ;;  %v2449_v58 = vld [vmem:[#allocation5 + $0x138] ss:$12 sps:$4 sm:$0xff]  }
  0x64   : > { %1621 = vmatpush1.bf16.msra.mxu0 %v2396_v19  ;;  %1581 = vmatprep.subr.bf16.mxu1 %v2397_v20  ;;  %v2447_v57 = vld [vmem:[#allocation5 + $0x2bc] ss:$12 sps:$4 sm:$0xff]   ;;  %v2450_v59 = vld [vmem:[#allocation5 + $0x2b8] ss:$12 sps:$4 sm:$0xff]   ;;  %v2451_v60 = vld [vmem:[#allocation5 + $0x154] ss:$12 sps:$4 sm:$0xff]  }
  0x65   : > { %1622 = vmatprep.subr.bf16.mxu0 %v2399_v21  ;;  %1603 = vmatprep.mubr.bf16.mxu1 %v2886_v48  ;;  %v2453_v61 = vld [vmem:[#allocation5 + $0x2d4] ss:$12 sps:$4 sm:$0xff]   ;;  %v2455_v62 = vld [vmem:[#allocation5 + $0x150] ss:$12 sps:$4 sm:$0xff]   ;;  %v2457_v0 = vld [vmem:[#allocation5 + $0x16c] ss:$12 sps:$4 sm:$0xff]  }
  0x66   : > { %1644 = vmatprep.mubr.bf16.mxu0 %v2889_v52  ;;  %v2456_v63 = vld [vmem:[#allocation5 + $0x2d0] ss:$12 sps:$4 sm:$0xff]   ;;  %v2459_v1 = vld [vmem:[#allocation5 + $0x2ec] ss:$12 sps:$4 sm:$0xff]   ;;  %v2461_v2 = vld [vmem:[#allocation5 + $0x168] ss:$12 sps:$4 sm:$0xff]  }
  0x67   : > { %1582 = vmatpush1.bf16.msra.mxu1 %v2401_v22  ;;  %v2462_v3 = vld [vmem:[#allocation5 + $0x2e8] ss:$12 sps:$4 sm:$0xff]   ;;  %v258_v4 = vld [vmem:[%s2875_s9] sm:$0xff]  ;;  %v2473_v18 = vld [vmem:[#allocation5 + $0x330] ss:$12 sps:$4 sm:$0xff]   ;;  %s2963_s4 = smov (!%p253_p6, %s2781_s4), 1 }
  0x68   : > { %1623 = vmatpush1.bf16.msra.mxu0 %v2402_v23  ;;  %1583 = vmatprep.subr.bf16.mxu1 %v2403_v24  ;;  %v260_v5 = vld [vmem:[%s2875_s9 + $0x10] sm:$0xff]  ;;  %v2463_v8 = vld [vmem:[#allocation5 + $0x300] ss:$12 sps:$4 sm:$0xff]   ;;  %v2895_v9 = vpack.c.bf16 %v258_v4, %v258_v4  ;;  %v2470_v12 = vld [vmem:[#allocation5 + $0x31c] ss:$12 sps:$4 sm:$0xff]   ;;  %s2018_s30 = sshll.u32 %s2963_s4, 3 }
  0x69   : > { %1624 = vmatprep.subr.bf16.mxu0 %v2405_v25  ;;  %v2465_v6 = vld [vmem:[#allocation5 + $0x304] ss:$12 sps:$4 sm:$0xff]   ;;  %v2466_v7 = vld [vmem:[#allocation5 + $0xc8] ss:$12 sps:$4 sm:$0xff]   ;;  %v2897_v10 = vpack.c.bf16 %v260_v5, %v260_v5  ;;  %v2471_v13 = vld [vmem:[#allocation5 + $0xe0] ss:$12 sps:$4 sm:$0xff]   ;;  %s256_s11 = scalar_lea.vmem %s2946_s5, %s2018_s30 }
  0x6a   : > { %v2467_v11 = vld [vmem:[#allocation5 + $0x8] ss:$12 sps:$4 sm:$0xff]   ;;  %v2468_v14 = vld [vmem:[#allocation5 + $0x318] ss:$12 sps:$4 sm:$0xff]   ;;  %v2472_v15 = vld [vmem:[#allocation5 + $0x20] ss:$12 sps:$4 sm:$0xff]  }
  0x6b   : > { %1584 = vmatpush1.bf16.msra.mxu1 %v2407_v26  ;;  %v2475_v16 = vld [vmem:[#allocation5 + $0x334] ss:$12 sps:$4 sm:$0xff]   ;;  %v2476_v17 = vld [vmem:[#allocation5 + $0xf8] ss:$12 sps:$4 sm:$0xff]   ;;  %v2481_v21 = vld [vmem:[#allocation5 + $0x110] ss:$12 sps:$4 sm:$0xff]  }
  0x6c   : > { %1625 = vmatpush1.bf16.msra.mxu0 %v2408_v27  ;;  %1585 = vmatprep.subr.bf16.mxu1 %v2409_v28  ;;  %v2477_v19 = vld [vmem:[#allocation5 + $0x38] ss:$12 sps:$4 sm:$0xff]   ;;  %v2478_v22 = vld [vmem:[#allocation5 + $0x348] ss:$12 sps:$4 sm:$0xff]   ;;  %v2482_v23 = vld [vmem:[#allocation5 + $0x50] ss:$12 sps:$4 sm:$0xff]  }
  0x6d   : > { %1626 = vmatprep.subr.bf16.mxu0 %v2411_v29  ;;  %v2480_v20 = vld [vmem:[#allocation5 + $0x34c] ss:$12 sps:$4 sm:$0xff]   ;;  %v2485_v24 = vld [vmem:[#allocation5 + $0x364] ss:$12 sps:$4 sm:$0xff]   ;;  %v2486_v25 = vld [vmem:[#allocation5 + $0x128] ss:$12 sps:$4 sm:$0xff]  }
  0x6e   : > { %v2483_v26 = vld [vmem:[#allocation5 + $0x360] ss:$12 sps:$4 sm:$0xff]   ;;  %v2487_v27 = vld [vmem:[#allocation5 + $0x68] ss:$12 sps:$4 sm:$0xff]   ;;  %v2533_v4 = vld [vmem:[#allocation5 + $0x450] ss:$12 sps:$4 sm:$0xff]  }
  0x6f   : > { %1586 = vmatpush1.bf16.msra.mxu1 %v2413_v30  ;;  %v2490_v28 = vld [vmem:[#allocation5 + $0x37c] ss:$12 sps:$4 sm:$0xff]   ;;  %v2491_v29 = vld [vmem:[#allocation5 + $0x140] ss:$12 sps:$4 sm:$0xff]   ;;  %v2488_v30 = vld [vmem:[#allocation5 + $0x378] ss:$12 sps:$4 sm:$0xff]  }
  0x70   : > { %1627 = vmatpush1.bf16.msra.mxu0 %v2414_v31  ;;  %1587 = vmatprep.subr.bf16.mxu1 %v2415_v32  ;;  %v2492_v31 = vld [vmem:[#allocation5 + $0x80] ss:$12 sps:$4 sm:$0xff]   ;;  %v2537_v5 = vld [vmem:[#allocation5 + $0x218] ss:$12 sps:$4 sm:$0xff]   ;;  %vm1931_vm0 = vcmask 7168  }
  0x71   : > { %1628 = vmatprep.subr.bf16.mxu0 %v2417_v33  ;;  %v2495_v32 = vld [vmem:[#allocation5 + $0x394] ss:$12 sps:$4 sm:$0xff]   ;;  %v2496_v33 = vld [vmem:[#allocation5 + $0x158] ss:$12 sps:$4 sm:$0xff]   ;;  %v263_v46 = vld [vmem:[%s2875_s9 + $0x28] sm:$0xff] }
  0x72   : > { %v2512_v49 = vld [vmem:[#allocation5 + $0x1a0] ss:$12 sps:$4 sm:$0xff]  }
  0x73   : > { %1588 = vmatpush1.bf16.msra.mxu1 %v2419_v34  ;;  %v2493_v34 = vld [vmem:[#allocation5 + $0x390] ss:$12 sps:$4 sm:$0xff]  }
  0x74   : > { %1629 = vmatpush1.bf16.msra.mxu0 %v2420_v35  ;;  %1589 = vmatprep.subr.bf16.mxu1 %v2421_v36  ;;  %v2497_v35 = vld [vmem:[#allocation5 + $0x98] ss:$12 sps:$4 sm:$0xff]  }
  0x75   : > { %1630 = vmatprep.subr.bf16.mxu0 %v2423_v37  ;;  %v2500_v36 = vld [vmem:[#allocation5 + $0x3ac] ss:$12 sps:$4 sm:$0xff]   ;;  %v2501_v37 = vld [vmem:[#allocation5 + $0x170] ss:$12 sps:$4 sm:$0xff]  }
  0x77   : > { %1590 = vmatpush1.bf16.msra.mxu1 %v2425_v38  ;;  %v2498_v38 = vld [vmem:[#allocation5 + $0x3a8] ss:$12 sps:$4 sm:$0xff]  }
  0x78   : > { %1631 = vmatpush1.bf16.msra.mxu0 %v2426_v39  ;;  %1591 = vmatprep.subr.bf16.mxu1 %v2427_v40  ;;  %v2502_v39 = vld [vmem:[#allocation5 + $0xb0] ss:$12 sps:$4 sm:$0xff]  }
  0x79   : > { %1632 = vmatprep.subr.bf16.mxu0 %v2429_v41  ;;  %v2505_v40 = vld [vmem:[#allocation5 + $0x3c4] ss:$12 sps:$4 sm:$0xff]   ;;  %v2506_v41 = vld [vmem:[#allocation5 + $0x248] ss:$12 sps:$4 sm:$0xff]  }
  0x7b   : > { %1592 = vmatpush1.bf16.msra.mxu1 %v2431_v42  ;;  %v2503_v42 = vld [vmem:[#allocation5 + $0x3c0] ss:$12 sps:$4 sm:$0xff]  }
  0x7c   : > { %1633 = vmatpush1.bf16.msra.mxu0 %v2432_v43  ;;  %1593 = vmatprep.subr.bf16.mxu1 %v2433_v44  ;;  %v2507_v43 = vld [vmem:[#allocation5 + $0x188] ss:$12 sps:$4 sm:$0xff]  }
  0x7d   : > { %1634 = vmatprep.subr.bf16.mxu0 %v2435_v45  ;;  %v2510_v44 = vld [vmem:[#allocation5 + $0x3dc] ss:$12 sps:$4 sm:$0xff]   ;;  %v2511_v45 = vld [vmem:[#allocation5 + $0x260] ss:$12 sps:$4 sm:$0xff]  }
  0x7f   : > { %1594 = vmatpush1.bf16.msra.mxu1 %v2437_v47  ;;  %v2508_v47 = vld [vmem:[#allocation5 + $0x3d8] ss:$12 sps:$4 sm:$0xff]  }
  0x80   : > { %1635 = vmatpush1.bf16.msra.mxu0 %v2438_v50  ;;  %1595 = vmatprep.subr.bf16.mxu1 %v2439_v51  ;;  %v2515_v50 = vld [vmem:[#allocation5 + $0x3f4] ss:$12 sps:$4 sm:$0xff]   ;;  %v2516_v51 = vld [vmem:[#allocation5 + $0x278] ss:$12 sps:$4 sm:$0xff]  }
  0x81   : > { %1636 = vmatprep.subr.bf16.mxu0 %v2441_v53  ;;  %v2513_v53 = vld [vmem:[#allocation5 + $0x3f0] ss:$12 sps:$4 sm:$0xff]  }
  0x83   : > { %1596 = vmatpush1.bf16.msra.mxu1 %v2443_v54  ;;  %v2517_v54 = vld [vmem:[#allocation5 + $0x1b8] ss:$12 sps:$4 sm:$0xff]  }
  0x84   : > { %1637 = vmatpush1.bf16.msra.mxu0 %v2444_v55  ;;  %1597 = vmatprep.subr.bf16.mxu1 %v2445_v56  ;;  %v2520_v55 = vld [vmem:[#allocation5 + $0x40c] ss:$12 sps:$4 sm:$0xff]   ;;  %v2521_v56 = vld [vmem:[#allocation5 + $0x290] ss:$12 sps:$4 sm:$0xff]  }
  0x85   : > { %1638 = vmatprep.subr.bf16.mxu0 %v2447_v57  ;;  %v2518_v57 = vld [vmem:[#allocation5 + $0x408] ss:$12 sps:$4 sm:$0xff]  }
  0x87   : > { %1598 = vmatpush1.bf16.msra.mxu1 %v2449_v58  ;;  %v2522_v58 = vld [vmem:[#allocation5 + $0x1d0] ss:$12 sps:$4 sm:$0xff]  }
  0x88   : > { %1639 = vmatpush1.bf16.msra.mxu0 %v2450_v59  ;;  %1599 = vmatprep.subr.bf16.mxu1 %v2451_v60  ;;  %v2525_v59 = vld [vmem:[#allocation5 + $0x424] ss:$12 sps:$4 sm:$0xff]   ;;  %v2526_v60 = vld [vmem:[#allocation5 + $0x2a8] ss:$12 sps:$4 sm:$0xff]  }
  0x89   : > { %1640 = vmatprep.subr.bf16.mxu0 %v2453_v61  ;;  %v2523_v61 = vld [vmem:[#allocation5 + $0x420] ss:$12 sps:$4 sm:$0xff]  }
  0x8b   : > { %1600 = vmatpush1.bf16.msra.mxu1 %v2455_v62  ;;  %v2530_v62 = vld [vmem:[#allocation5 + $0x43c] ss:$12 sps:$4 sm:$0xff]  }
  0x8c   : > { %1641 = vmatpush1.bf16.msra.mxu0 %v2456_v63  ;;  %1601 = vmatprep.subr.bf16.mxu1 %v2457_v0  ;;  %v2531_v63 = vld [vmem:[#allocation5 + $0x2c0] ss:$12 sps:$4 sm:$0xff]   ;;  %v2528_v0 = vld [vmem:[#allocation5 + $0x438] ss:$12 sps:$4 sm:$0xff]  }
  0x8d   : > { %1642 = vmatprep.subr.bf16.mxu0 %v2459_v1  ;;  %v2532_v1 = vld [vmem:[#allocation5 + $0x200] ss:$12 sps:$4 sm:$0xff]  }
  0x8f   : > { %1602 = vmatpush1.bf16.msra.mxu1 %v2461_v2  ;;  %v2535_v2 = vld [vmem:[#allocation5 + $0x454] ss:$12 sps:$4 sm:$0xff]  }
  0x90   : > { %1643 = vmatpush1.bf16.msra.mxu0 %v2462_v3  ;;  %2215 = vmatprep.subr.bf16.mxu1 %v2466_v7  ;;  %v2536_v3 = vld [vmem:[#allocation5 + $0x2d8] ss:$12 sps:$4 sm:$0xff]   ;;  %v2541_v7 = vld [vmem:[#allocation5 + $0x2f0] ss:$12 sps:$4 sm:$0xff]  }
  0x91   : > { %1653 = vmatprep.subr.bf16.mxu0 %v2465_v6  ;;  %v2540_v6 = vld [vmem:[#allocation5 + $0x46c] ss:$12 sps:$4 sm:$0xff]  }
  0x92   : > { %1604 = vmatmul.mubr.bf16.vlgmr.msra.gmra.mrb[0].mxu1 %v2895_v9 }
  0x93   : > { %1645 = vmatmul.mubr.bf16.vlgmr.msra.gmra.mrb[0].mxu0 %v2897_v10  ;;  %2216 = vmatpush3.bf16.msra.mxu1 %v2467_v11  ;;  %v262_v11 = vld [vmem:[%s2875_s9 + $0x20] sm:$0xff] }
  0x94   : > { %1654 = vmatpush1.bf16.msra.mxu0 %v2463_v8  ;;  %2217 = vmatprep.subr.bf16.mxu1 %v2471_v13  ;;  %v2538_v8 = vld [vmem:[#allocation5 + $0x468] ss:$12 sps:$4 sm:$0xff]  }
  0x95   : > { %1655 = vmatprep.subr.bf16.mxu0 %v2470_v12  ;;  %1767 = vmatprep.mubr.bf16.mxu1 %v2886_v48  ;;  %v2903_v48 = vpack.c.bf16 %v263_v46, %v263_v46  ;;  %v2545_v12 = vld [vmem:[#allocation5 + $0x484] ss:$12 sps:$4 sm:$0xff]   ;;  %v2546_v13 = vld [vmem:[#allocation5 + $0x3c8] ss:$12 sps:$4 sm:$0xff]  }
  0x96   : > { %v2585_v46 = vld [vmem:[#allocation5 + $0x544] ss:$12 sps:$4 sm:$0xff]  }
  0x97   : > { %2218 = vmatpush3.bf16.msra.mxu1 %v2472_v15  ;;  %1685 = vmatprep.mubr.bf16.mxu0 %v2903_v48  ;;  %v2909_v15 = vpack.c.bf16 %v262_v11, %v262_v11  ;;  %v2620_v11 = vld [vmem:[#allocation5 + $0x5ec] ss:$12 sps:$4 sm:$0xff]  }
  0x98   : > { %1656 = vmatpush1.bf16.msra.mxu0 %v2468_v14  ;;  %2219 = vmatprep.subr.bf16.mxu1 %v2476_v17  ;;  %v2543_v14 = vld [vmem:[#allocation5 + $0x480] ss:$12 sps:$4 sm:$0xff]   ;;  %v2550_v17 = vld [vmem:[#allocation5 + $0x49c] ss:$12 sps:$4 sm:$0xff]  }
  0x99   : > { %1657 = vmatprep.subr.bf16.mxu0 %v2475_v16  ;;  %v2547_v16 = vld [vmem:[#allocation5 + $0x308] ss:$12 sps:$4 sm:$0xff]  }
  0x9b   : > { %2220 = vmatpush3.bf16.msra.mxu1 %v2477_v19  ;;  %v2548_v19 = vld [vmem:[#allocation5 + $0x498] ss:$12 sps:$4 sm:$0xff]  }
  0x9c   : > { %1658 = vmatpush1.bf16.msra.mxu0 %v2473_v18  ;;  %2221 = vmatprep.subr.bf16.mxu1 %v2481_v21  ;;  %v2551_v18 = vld [vmem:[#allocation5 + $0x3e0] ss:$12 sps:$4 sm:$0xff]  }
  0x9d   : > { %1659 = vmatprep.subr.bf16.mxu0 %v2480_v20  ;;  %v2552_v20 = vld [vmem:[#allocation5 + $0x320] ss:$12 sps:$4 sm:$0xff]  }
  0x9e   : > { %v2555_v21 = vld [vmem:[#allocation5 + $0x4b4] ss:$12 sps:$4 sm:$0xff]  }
  0x9f   : > { %2222 = vmatpush3.bf16.msra.mxu1 %v2482_v23  ;;  %v2553_v23 = vld [vmem:[#allocation5 + $0x4b0] ss:$12 sps:$4 sm:$0xff]  }
  0xa0   : > { %1660 = vmatpush1.bf16.msra.mxu0 %v2478_v22  ;;  %2223 = vmatprep.subr.bf16.mxu1 %v2486_v25  ;;  %v2556_v22 = vld [vmem:[#allocation5 + $0x3f8] ss:$12 sps:$4 sm:$0xff]  }
  0xa1   : > { %1661 = vmatprep.subr.bf16.mxu0 %v2485_v24  ;;  %v2557_v24 = vld [vmem:[#allocation5 + $0x338] ss:$12 sps:$4 sm:$0xff]  }
  0xa2   : > { %v2560_v25 = vld [vmem:[#allocation5 + $0x4cc] ss:$12 sps:$4 sm:$0xff]  }
  0xa3   : > { %2224 = vmatpush3.bf16.msra.mxu1 %v2487_v27  ;;  %v2562_v27 = vld [vmem:[#allocation5 + $0x350] ss:$12 sps:$4 sm:$0xff]  }
  0xa4   : > { %1662 = vmatpush1.bf16.msra.mxu0 %v2483_v26  ;;  %2225 = vmatprep.subr.bf16.mxu1 %v2491_v29  ;;  %v2558_v26 = vld [vmem:[#allocation5 + $0x4c8] ss:$12 sps:$4 sm:$0xff]  }
  0xa5   : > { %1663 = vmatprep.subr.bf16.mxu0 %v2490_v28  ;;  %v2565_v28 = vld [vmem:[#allocation5 + $0x4e4] ss:$12 sps:$4 sm:$0xff]   ;;  %v2566_v29 = vld [vmem:[#allocation5 + $0x428] ss:$12 sps:$4 sm:$0xff]  }
  0xa7   : > { %2226 = vmatpush3.bf16.msra.mxu1 %v2492_v31  ;;  %v2567_v31 = vld [vmem:[#allocation5 + $0x368] ss:$12 sps:$4 sm:$0xff]  }
  0xa8   : > { %1664 = vmatpush1.bf16.msra.mxu0 %v2488_v30  ;;  %2227 = vmatprep.subr.bf16.mxu1 %v2496_v33  ;;  %v2563_v30 = vld [vmem:[#allocation5 + $0x4e0] ss:$12 sps:$4 sm:$0xff]  }
  0xa9   : > { %1665 = vmatprep.subr.bf16.mxu0 %v2495_v32  ;;  %v2570_v32 = vld [vmem:[#allocation5 + $0x4fc] ss:$12 sps:$4 sm:$0xff]   ;;  %v2571_v33 = vld [vmem:[#allocation5 + $0x440] ss:$12 sps:$4 sm:$0xff]  }
  0xab   : > { %2228 = vmatpush3.bf16.msra.mxu1 %v2497_v35  ;;  %v2572_v35 = vld [vmem:[#allocation5 + $0x380] ss:$12 sps:$4 sm:$0xff]  }
  0xac   : > { %1666 = vmatpush1.bf16.msra.mxu0 %v2493_v34  ;;  %2229 = vmatprep.subr.bf16.mxu1 %v2501_v37  ;;  %v2568_v34 = vld [vmem:[#allocation5 + $0x4f8] ss:$12 sps:$4 sm:$0xff]  }
  0xad   : > { %1667 = vmatprep.subr.bf16.mxu0 %v2500_v36  ;;  %v2575_v36 = vld [vmem:[#allocation5 + $0x514] ss:$12 sps:$4 sm:$0xff]   ;;  %v2576_v37 = vld [vmem:[#allocation5 + $0x458] ss:$12 sps:$4 sm:$0xff]  }
  0xaf   : > { %2230 = vmatpush3.bf16.msra.mxu1 %v2502_v39  ;;  %v2573_v39 = vld [vmem:[#allocation5 + $0x510] ss:$12 sps:$4 sm:$0xff]  }
  0xb0   : > { %1668 = vmatpush1.bf16.msra.mxu0 %v2498_v38  ;;  %2237 = vmatprep.subr.bf16.mxu1 %v2506_v41  ;;  %v265_v38 = vld [vmem:[%s2875_s9 + $0x38] sm:$0xff] }
  0xb1   : > { %1669 = vmatprep.subr.bf16.mxu0 %v2505_v40  ;;  %v2577_v40 = vld [vmem:[#allocation5 + $0x398] ss:$12 sps:$4 sm:$0xff]   ;;  %v273_v41 = vpack.c.bf16 %v265_v38, %v265_v38 }
  0xb2   : > { %1768 = vmatmul.mubr.bf16.vlgmr.msra.gmra.mrb[4].mxu1 %v2895_v9  ;;  %v2542_v9 = vld [vmem:[#allocation5 + $0x230] ss:$12 sps:$4 sm:$0xff]  }
  0xb3   : > { %2238 = vmatpush3.bf16.msra.mxu1 %v2507_v43  ;;  %1807 = vmatprep.mubr.bf16.mxu1 %v2889_v52  ;;  %v2527_v52 = vld [vmem:[#allocation5 + $0x1e8] ss:$12 sps:$4 sm:$0xff]   ;;  %v2581_v43 = vld [vmem:[#allocation5 + $0x470] ss:$12 sps:$4 sm:$0xff]  }
  0xb4   : > { %1670 = vmatpush1.bf16.msra.mxu0 %v2503_v42  ;;  %2239 = vmatprep.subr.bf16.mxu1 %v2511_v45  ;;  %v2580_v42 = vld [vmem:[#allocation5 + $0x52c] ss:$12 sps:$4 sm:$0xff]   ;;  %v2582_v45 = vld [vmem:[#allocation5 + $0x3b0] ss:$12 sps:$4 sm:$0xff]  }
  0xb5   : > { %1671 = vmatprep.subr.bf16.mxu0 %v2510_v44  ;;  %v2578_v44 = vld [vmem:[#allocation5 + $0x528] ss:$12 sps:$4 sm:$0xff]  }
  0xb7   : > { %2240 = vmatpush3.bf16.msra.mxu1 %v2512_v49  ;;  %v2587_v49 = vld [vmem:[#allocation5 + $0x488] ss:$12 sps:$4 sm:$0xff]  }
  0xb8   : > { %1672 = vmatpush1.bf16.msra.mxu0 %v2508_v47  ;;  %2241 = vmatprep.subr.bf16.mxu1 %v2516_v51  ;;  %v2586_v47 = vld [vmem:[#allocation5 + $0x548] ss:$12 sps:$4 sm:$0xff]   ;;  %v2591_v51 = vld [vmem:[#allocation5 + $0x560] ss:$12 sps:$4 sm:$0xff]  }
  0xb9   : > { %1673 = vmatprep.subr.bf16.mxu0 %v2515_v50  ;;  %v2590_v50 = vld [vmem:[#allocation5 + $0x55c] ss:$12 sps:$4 sm:$0xff]  }
  0xbb   : > { %2242 = vmatpush3.bf16.msra.mxu1 %v2517_v54  ;;  %v2592_v54 = vld [vmem:[#allocation5 + $0x4a0] ss:$12 sps:$4 sm:$0xff]  }
  0xbc   : > { %1674 = vmatpush1.bf16.msra.mxu0 %v2513_v53  ;;  %2243 = vmatprep.subr.bf16.mxu1 %v2521_v56  ;;  %v2588_v53 = vld [vmem:[#allocation5 + $0x558] ss:$12 sps:$4 sm:$0xff]  }
  0xbd   : > { %1675 = vmatprep.subr.bf16.mxu0 %v2520_v55  ;;  %v2595_v55 = vld [vmem:[#allocation5 + $0x574] ss:$12 sps:$4 sm:$0xff]   ;;  %v2596_v56 = vld [vmem:[#allocation5 + $0x578] ss:$12 sps:$4 sm:$0xff]  }
  0xbf   : > { %2244 = vmatpush3.bf16.msra.mxu1 %v2522_v58  ;;  %v2597_v58 = vld [vmem:[#allocation5 + $0x4b8] ss:$12 sps:$4 sm:$0xff]  }
  0xc0   : > { %1676 = vmatpush1.bf16.msra.mxu0 %v2518_v57  ;;  %2245 = vmatprep.subr.bf16.mxu1 %v2526_v60  ;;  %v2593_v57 = vld [vmem:[#allocation5 + $0x570] ss:$12 sps:$4 sm:$0xff]  }
  0xc1   : > { %1677 = vmatprep.subr.bf16.mxu0 %v2525_v59  ;;  %v2600_v59 = vld [vmem:[#allocation5 + $0x58c] ss:$12 sps:$4 sm:$0xff]   ;;  %v2601_v60 = vld [vmem:[#allocation5 + $0x590] ss:$12 sps:$4 sm:$0xff]  }
  0xc3   : > { %2246 = vmatpush3.bf16.msra.mxu1 %v2527_v52  ;;  %v2602_v52 = vld [vmem:[#allocation5 + $0x4d0] ss:$12 sps:$4 sm:$0xff]  }
  0xc4   : > { %1678 = vmatpush1.bf16.msra.mxu0 %v2523_v61  ;;  %2247 = vmatprep.subr.bf16.mxu1 %v2531_v63  ;;  %v2598_v61 = vld [vmem:[#allocation5 + $0x588] ss:$12 sps:$4 sm:$0xff]  }
  0xc5   : > { %1679 = vmatprep.subr.bf16.mxu0 %v2530_v62  ;;  %v2605_v62 = vld [vmem:[#allocation5 + $0x5a4] ss:$12 sps:$4 sm:$0xff]   ;;  %v2606_v63 = vld [vmem:[#allocation5 + $0x5a8] ss:$12 sps:$4 sm:$0xff]  }
  0xc7   : > { %2248 = vmatpush3.bf16.msra.mxu1 %v2532_v1  ;;  %v2607_v1 = vld [vmem:[#allocation5 + $0x4e8] ss:$12 sps:$4 sm:$0xff]  }
  0xc8   : > { %1680 = vmatpush1.bf16.msra.mxu0 %v2528_v0  ;;  %2249 = vmatprep.subr.bf16.mxu1 %v2536_v3  ;;  %v2603_v0 = vld [vmem:[#allocation5 + $0x5a0] ss:$12 sps:$4 sm:$0xff]  }
  0xc9   : > { %1681 = vmatprep.subr.bf16.mxu0 %v2535_v2  ;;  %v2610_v2 = vld [vmem:[#allocation5 + $0x5bc] ss:$12 sps:$4 sm:$0xff]   ;;  %v2611_v3 = vld [vmem:[#allocation5 + $0x5c0] ss:$12 sps:$4 sm:$0xff]  }
  0xcb   : > { %2250 = vmatpush3.bf16.msra.mxu1 %v2537_v5  ;;  %v2612_v5 = vld [vmem:[#allocation5 + $0x500] ss:$12 sps:$4 sm:$0xff]  }
  0xcc   : > { %1682 = vmatpush1.bf16.msra.mxu0 %v2533_v4  ;;  %2251 = vmatprep.subr.bf16.mxu1 %v2541_v7  ;;  %v2608_v4 = vld [vmem:[#allocation5 + $0x5b8] ss:$12 sps:$4 sm:$0xff]  }
  0xcd   : > { %1683 = vmatprep.subr.bf16.mxu0 %v2540_v6  ;;  %v2615_v6 = vld [vmem:[#allocation5 + $0x5d4] ss:$12 sps:$4 sm:$0xff]   ;;  %v2616_v7 = vld [vmem:[#allocation5 + $0x5d8] ss:$12 sps:$4 sm:$0xff]  }
  0xcf   : > { %2252 = vmatpush3.bf16.msra.mxu1 %v2542_v9  ;;  %v2617_v9 = vld [vmem:[#allocation5 + $0x518] ss:$12 sps:$4 sm:$0xff]  }
  0xd0   : > { %1684 = vmatpush1.bf16.msra.mxu0 %v2538_v8  ;;  %2259 = vmatprep.subr.bf16.mxu1 %v2546_v13  ;;  %v2613_v8 = vld [vmem:[#allocation5 + $0x5d0] ss:$12 sps:$4 sm:$0xff]   ;;  %v2618_v13 = vld [vmem:[#allocation5 + $0x5e8] ss:$12 sps:$4 sm:$0xff]  }
  0xd1   : > { %1694 = vmatprep.subr.bf16.mxu0 %v2545_v12  ;;  %v2621_v12 = vld [vmem:[#allocation5 + $0x5f0] ss:$12 sps:$4 sm:$0xff]  }
  0xd2   : > { %1808 = vmatmul.mubr.bf16.vlgmr.msra.gmra.mrb[8].mxu1 %v2897_v10  ;;  %v2561_v10 = vld [vmem:[#allocation5 + $0x410] ss:$12 sps:$4 sm:$0xff]  }
  0xd3   : > { %1686 = vmatmul.mubr.bf16.vlgmr.msra.gmra.mrb[0].mxu0 %v2909_v15  ;;  %2260 = vmatpush3.bf16.msra.mxu1 %v2547_v16 }
  0xd4   : > { %1695 = vmatpush1.bf16.msra.mxu0 %v2543_v14  ;;  %2261 = vmatprep.subr.bf16.mxu1 %v2551_v18  ;;  %v2622_v14 = vld [vmem:[#allocation5 + $0x530] ss:$12 sps:$4 sm:$0xff]  }
  0xd5   : > { %1696 = vmatprep.subr.bf16.mxu0 %v2550_v17  ;;  %1847 = vmatprep.mubr.bf16.mxu1 %v2903_v48  ;;  %v2583_v48 = vld [vmem:[#allocation5 + $0x540] ss:$12 sps:$4 sm:$0xff]  }
  0xd6   : > { %1726 = vmatprep.mubr.bf16.mxu0 %v273_v41 }
  0xd7   : > { %2262 = vmatpush3.bf16.msra.mxu1 %v2552_v20 }
  0xd8   : > { %1697 = vmatpush1.bf16.msra.mxu0 %v2548_v19  ;;  %2263 = vmatprep.subr.bf16.mxu1 %v2556_v22 }
  0xd9   : > { %1698 = vmatprep.subr.bf16.mxu0 %v2555_v21 }
  0xdb   : > { %2264 = vmatpush3.bf16.msra.mxu1 %v2557_v24 }
  0xdc   : > { %1699 = vmatpush1.bf16.msra.mxu0 %v2553_v23  ;;  %2265 = vmatprep.subr.bf16.mxu1 %v2561_v10  ;;  %v532_v10 = vlaneseq }
  0xdd   : > { %1700 = vmatprep.subr.bf16.mxu0 %v2560_v25 }
  0xdf   : > { %2266 = vmatpush3.bf16.msra.mxu1 %v2562_v27 }
  0xe0   : > { %1701 = vmatpush1.bf16.msra.mxu0 %v2558_v26  ;;  %2267 = vmatprep.subr.bf16.mxu1 %v2566_v29  ;;  %v533_v26 = vshrl.u32 %v532_v10, 7 }
  0xe1   : > { %1702 = vmatprep.subr.bf16.mxu0 %v2565_v28  ;;  %v530_v28 = vld [vmem:[%s2943_s2] sm:$0x7] }
  0xe2   : > { %v542_v27 = vsub.s32 2, %v533_v26 }
  0xe3   : > { %2268 = vmatpush3.bf16.msra.mxu1 %v2567_v31 }
  0xe4   : > { %1703 = vmatpush1.bf16.msra.mxu0 %v2563_v30  ;;  %2269 = vmatprep.subr.bf16.mxu1 %v2571_v33  ;;  %v543_v29 = vrot.slane %v530_v28, %v542_v27 }
  0xe5   : > { %1704 = vmatprep.subr.bf16.mxu0 %v2570_v32 }
  0xe7   : > { %2270 = vmatpush3.bf16.msra.mxu1 %v2572_v35 }
  0xe8   : > { %1705 = vmatpush1.bf16.msra.mxu0 %v2568_v34  ;;  %2271 = vmatprep.subr.bf16.mxu1 %v2576_v37 }
  0xe9   : > { %1706 = vmatprep.subr.bf16.mxu0 %v2575_v36 }
  0xeb   : > { %2272 = vmatpush3.bf16.msra.mxu1 %v2577_v40 }
  0xec   : > { %1707 = vmatpush1.bf16.msra.mxu0 %v2573_v39  ;;  %2273 = vmatprep.subr.bf16.mxu1 %v2581_v43  ;;  %v534_v43 = vsub.s32 0, %v533_v26 }
  0xed   : > { %1708 = vmatprep.subr.bf16.mxu0 %v2580_v42 }
  0xef   : > { %2274 = vmatpush3.bf16.msra.mxu1 %v2582_v45  ;;  %v535_v45 = vrot.slane %v530_v28, %v534_v43 }
  0xf0   : > { %1709 = vmatpush1.bf16.msra.mxu0 %v2578_v44  ;;  %2281 = vmatprep.subr.bf16.mxu1 %v2586_v47  ;;  %v538_v44 = vsub.s32 1, %v533_v26  ;;  %v1898_v47 = vld [vmem:[%s2944_s3] sm:$0x7] }
  0xf1   : > { %1710 = vmatprep.subr.bf16.mxu0 %v2585_v46 }
  0xf2   : > { %1848 = vmatmul.mubr.bf16.vlgmr.msra.gmra.mrb[12].mxu1 %v2909_v15  ;;  %v264_v15 = vld [vmem:[%s2875_s9 + $0x30] sm:$0xff]  ;;  %v539_v46 = vrot.slane %v530_v28, %v538_v44 }
  0xf3   : > { %2282 = vmatpush3.bf16.msra.mxu1 %v2587_v49  ;;  %1887 = vmatprep.mubr.bf16.mxu1 %v273_v41  ;;  %v272_v16 = vpack.c.bf16 %v264_v15, %v264_v15 }
  0xf4   : > { %1711 = vmatpush1.bf16.msra.mxu0 %v2583_v48  ;;  %2283 = vmatprep.subr.bf16.mxu1 %v2591_v51 }
  0xf5   : > { %1712 = vmatprep.subr.bf16.mxu0 %v2590_v50 }
  0xf7   : > { %2284 = vmatpush3.bf16.msra.mxu1 %v2592_v54  ;;  %v1903_v54 = vrot.slane %v1898_v47, %v534_v43 }
  0xf8   : > { %1713 = vmatpush1.bf16.msra.mxu0 %v2588_v53  ;;  %2285 = vmatprep.subr.bf16.mxu1 %v2596_v56 }
  0xf9   : > { %1714 = vmatprep.subr.bf16.mxu0 %v2595_v55 }
  0xfb   : > { %2286 = vmatpush3.bf16.msra.mxu1 %v2597_v58  ;;  %v1907_v58 = vrot.slane %v1898_v47, %v538_v44 }
  0xfc   : > { %1715 = vmatpush1.bf16.msra.mxu0 %v2593_v57  ;;  %2287 = vmatprep.subr.bf16.mxu1 %v2601_v60 }
  0xfd   : > { %1716 = vmatprep.subr.bf16.mxu0 %v2600_v59 }
  0xff   : > { %2288 = vmatpush3.bf16.msra.mxu1 %v2602_v52 }
 0x100   : > { %1717 = vmatpush1.bf16.msra.mxu0 %v2598_v61  ;;  %2289 = vmatprep.subr.bf16.mxu1 %v2606_v63 }
 0x101   : > { %1718 = vmatprep.subr.bf16.mxu0 %v2605_v62 }
 0x103   : > { %2290 = vmatpush3.bf16.msra.mxu1 %v2607_v1 }
 0x104   : > { %1719 = vmatpush1.bf16.msra.mxu0 %v2603_v0  ;;  %2291 = vmatprep.subr.bf16.mxu1 %v2611_v3 }
 0x105   : > { %1720 = vmatprep.subr.bf16.mxu0 %v2610_v2  ;;  %v1911_v2 = vrot.slane %v1898_v47, %v542_v27 }
 0x107   : > { %2292 = vmatpush3.bf16.msra.mxu1 %v2612_v5 }
 0x108   : > { %1721 = vmatpush1.bf16.msra.mxu0 %v2608_v4  ;;  %2293 = vmatprep.subr.bf16.mxu1 %v2616_v7 }
 0x109   : > { %1722 = vmatprep.subr.bf16.mxu0 %v2615_v6 }
 0x10b   : > { %2294 = vmatpush3.bf16.msra.mxu1 %v2617_v9  ;;  %v1923_v9 = vstv %s1922_s28 }
 0x10c   : > { %1723 = vmatpush1.bf16.msra.mxu0 %v2613_v8  ;;  %2295 = vmatprep.subr.bf16.mxu1 %v2621_v12 }
 0x10d   : > { %1724 = vmatprep.subr.bf16.mxu0 %v2620_v11 }
 0x10f   : > { %2296 = vmatpush3.bf16.msra.mxu1 %v2622_v14 }
 0x110   : > { %1725 = vmatpush1.bf16.msra.mxu0 %v2618_v13 }
 0x112   : > { %1888 = vmatmul.mubr.bf16.vlgmr.msra.gmra.mrb[16].mxu1 %v272_v16 }
 0x113   : > { %1727 = vmatmul.mubr.bf16.vlgmr.msra.gmra.mrb[0].mxu0 %v272_v16 }
 0x165   : > { %v1605_v17 = vpop.f32.mrb[0].mxu1 }
 0x166   : > { %v1607_v18 = vpop.f32.mrb[1].mxu1  ;;  %v1606_v48 = vadd.f32 %v1605_v17, %v535_v45 }
 0x167   : > { %v1609_v19 = vpop.f32.mrb[2].mxu1  ;;  %v1608_v49 = vadd.f32 %v1607_v18, %v539_v46 }
 0x168   : > { %v1610_v20 = vpop.f32.mrb[3].mxu1 }
 0x185   : > { %v2231_v21 = vpop.f32.mrb[4].mxu1 }
 0x186   : > { %v2232_v22 = vpop.f32.mrb[5].mxu1 }
 0x187   : > { %v2233_v23 = vadd.f32 %v2232_v22, %v2231_v21  ;;  %v2234_v24 = vpop.f32.mrb[6].mxu1 }
 0x188   : > { %v2235_v25 = vpop.f32.mrb[7].mxu1 }
 0x189   : > { %v1770_v32 = vadd.f32 %v2233_v23, %v543_v29 }
 0x1a5   : > { %v2253_v30 = vpop.f32.mrb[8].mxu1 }
 0x1a6   : > { %v2254_v31 = vpop.f32.mrb[9].mxu1 }
 0x1a7   : > { %v2255_v33 = vadd.f32 %v2254_v31, %v2253_v30  ;;  %v2256_v34 = vpop.f32.mrb[10].mxu1 }
 0x1a8   : > { %v2257_v35 = vpop.f32.mrb[11].mxu1 }
 0x1a9   : > { %v1810_v36 = vadd.f32 %v2255_v33, %v1770_v32 }
 0x1c5   : > { %v2275_v37 = vpop.f32.mrb[12].mxu1 }
 0x1c6   : > { %v2276_v38 = vpop.f32.mrb[13].mxu1 }
 0x1c7   : > { %v2277_v39 = vadd.f32 %v2276_v38, %v2275_v37  ;;  %v2278_v40 = vpop.f32.mrb[14].mxu1 }
 0x1c8   : > { %v2279_v41 = vpop.f32.mrb[15].mxu1 }
 0x1c9   : > { %v1850_v42 = vadd.f32 %v2277_v39, %v1810_v36 }
 0x1e5   : > { %v2297_v51 = vpop.f32.mrb[16].mxu1 }
 0x1e6   : > { %v1728_v50 = vpop.f32.mrb[0].mxu0  ;;  %v2298_v56 = vpop.f32.mrb[17].mxu1 }
 0x1e7   : > { %v2304_v53 = vadd.f32 %v1728_v50, %v1606_v48  ;;  %v1730_v55 = vpop.f32.mrb[1].mxu0  ;;  %v2299_v59 = vadd.f32 %v2298_v56, %v2297_v51  ;;  %v2300_v61 = vpop.f32.mrb[18].mxu1 }
 0x1e8   : > { %v2306_v57 = vadd.f32 %v1730_v55, %v1608_v49  ;;  %v1732_v60 = vpop.f32.mrb[2].mxu0  ;;  %v2301_v63 = vpop.f32.mrb[19].mxu1 }
 0x1e9   : > { %v1895_v52 = vmax.f32 %v2304_v53, 0.0  ;;  %v1733_v62 = vpop.f32.mrb[3].mxu0  ;;  %v1890_v1 = vadd.f32 %v2299_v59, %v1850_v42 }
 0x1ea   : > { %v1896_v0 = vmax.f32 %v2306_v57, 0.0 }
 0x1eb   : > { %v1915_v3 = vmul.f32 %v1903_v54, %v1895_v52  ;;  %v1897_v5 = vmax.f32 %v1890_v1, 0.0 }
 0x1ec   : > { %v1916_v4 = vmul.f32 %v1907_v58, %v1896_v0 }
 0x1ed   : > { %v1917_v6 = vmul.f32 %v1911_v2, %v1897_v5 }
 0x1ee   : > { %v1918_v7 = vadd.f32 %v1916_v4, %v1915_v3 }
 0x1f0   : > { %v1919_v8 = vadd.f32 %v1918_v7, %v1917_v6 }
 0x1f2   : > { %1920 = vadd.xlane.f32.xlu0 %v1919_v8 }
 0x27f   : > { %v1921_v11 = vpop.xlane.xlu0 %1920 }
 0x280   : > { %v1924_v12 = vadd.f32 %v1923_v9, %v1921_v11 }
 0x282   : > { %v2211_v13 = vmul.f32 -1.442695, %v1924_v12 }
 0x284   : > { %2623 = vpow2.f32 %v2211_v13 }
 0x28e   : > { %v2624_v14 = vpop.eup %2623 }
 0x28f   : > { %v1928_v15 = vadd.f32 1.0, %v2624_v14 }
 0x291   : > { %2625 = vrcp.f32 %v1928_v15 }
 0x29b   : > { %v2626_v16 = vpop.eup %2625 }
 0x29c   : > { %1932 = vst.msk [vmem:[%s256_s11] sm:$0xff] %vm1931_vm0, %v2626_v16 }
 0x29d PF: > { %p17_p8 = scmp.ge.s32.totalorder %s2806_s29, 4   ;;  %s2958_s20 = smov %s2715_s21 }
 0x29e   : > { %s2959_s21 = smov %s2719_s22  ;;  %s2960_s22 = smov %s2832_s19 }
 0x29f   : > { %s2961_s23 = smov %s2806_s29  ;;  %19 = sbr.rel (!%p17_p8) target bundleno = 6 (0x6), region = 84 }
 0x2a6   :  { %1952 = vsyncpa [#allocation4], 1 }
 0x2a7   :  { %1954 = vsyncpa [#allocation4 + $0x1], 1 }
 0x2a8   :  { %1955 = vsyncpa [#allocation6], 1 }

</bundles_post_ra>
